<compile_context>
chip_gen: v7x
topology: tpu7x:2x2x1
jax: 0.10.0
libtpu: 0.0.40
codegen_flags: <defaults>
</compile_context>

<pallas_src>
import functools

import jax
import jax.numpy as jnp
from jax.experimental import pallas as pl
from jax.experimental.pallas import tpu as pltpu

# ---- model dims (PyTorch reference: NKF(L=4), fc_dim = rnn_dim = 18) ----
L = 4
IN_DIM = 2 * L + 1          # 9
FC_DIM = 18
RNN_DIM = 18

# ---- packed (sublane-aligned) kernel layout ----
LANE = 128                  # frequency-bin batch lives on lanes
X_ROWS, X_ONES = 24, 18     # [x_r(9); x_i(9); 1; pad]
F_ROWS, F_ONES = 40, 36     # [f_r(18); f_i(18); 1; pad]
GBLK = 4 * RNN_DIM          # 72 rows per gate block: [rr|ir|ri|ii] x 18
GATE_ROWS = 3 * GBLK        # 216 rows total: [r | z | n]
H_ROWS, H_ONES = 80, 72     # [Frr;Fir;Fri;Fii](72); 1; pad
G_ROWS, G_ONES = 40, 36     # [g_r(18); g_i(18); 1; pad]
K_ROWS = 8                  # [k_r(4); k_i(4)]


def nkf_kernel(x_ref, h_ref, w_in_ref, w_ih_ref, w_hh_ref,
               w_o1_ref, w_o2_ref, prelu_ref, k_ref, h_out_ref):
    """One lane-tile of the NKF gain-network forward.

    Features live on sublanes, frequency bins on lanes.  Every bias is folded
    into the bf16 weight slabs through constant-one rows; gate/elementwise
    math and the recurrent hidden state stay in f32.
    """
    h = h_ref[...]                                   # (H_ROWS, TB) f32, row H_ONES == 1
    a1 = prelu_ref[0]
    a2 = prelu_ref[1]

    def mm(w_ref, v):                                # bf16 MXU matmul, f32 accumulate
        return jnp.dot(w_ref[...], v.astype(jnp.bfloat16),
                       preferred_element_type=jnp.float32)

    # fc_in (block-diag ComplexDense 9->18) + shared ComplexPReLU
    f = mm(w_in_ref, x_ref[...])                     # (F_ROWS, TB); row F_ONES == 1
    f = jnp.where(f >= 0.0, f, a1 * f)

    # ComplexGRU: 4 single-step GRU evals fused into 2 matmuls.
    gi = mm(w_ih_ref, f)                             # (216, TB)
    gh = mm(w_hh_ref, h)                             # (216, TB)
    r = jax.nn.sigmoid(gi[0:GBLK] + gh[0:GBLK])
    z = jax.nn.sigmoid(gi[GBLK:2 * GBLK] + gh[GBLK:2 * GBLK])
    n = jnp.tanh(gi[2 * GBLK:3 * GBLK] + r * gh[2 * GBLK:3 * GBLK])
    h_new = (1.0 - z) * n + z * h[0:GBLK]            # (72, TB) = [Frr;Fir;Fri;Fii]

    # Re-append the invariant [1, 0..0] tail so the bias row survives the step.
    h_ext = jnp.concatenate([h_new, h[GBLK:H_ROWS]], axis=0)   # (H_ROWS, TB)

    # fc_out: recombination (y_r=Frr-Fii, y_i=Fri+Fir) is folded into w_o1,
    # so h_ext feeds fc_out1 directly; shared PReLU; fc_out2 (18->4).
    g = mm(w_o1_ref, h_ext)                          # (G_ROWS, TB); row G_ONES == 1
    g = jnp.where(g >= 0.0, g, a2 * g)
    k_ref[...] = mm(w_o2_ref, g)                     # (K_ROWS, TB) = [k_r; k_i]
    h_out_ref[...] = h_ext


# ----------------------------------------------------------------------------
# parameters (PyTorch layout) and packing into fused bf16 weight slabs
# ----------------------------------------------------------------------------
def init_params(key):
    """Deterministic synthetic parameters in PyTorch layout: W is (out, in)."""
    ks = jax.random.split(key, 20)

    def rn(k, shape, scale=0.1):
        return scale * jax.random.normal(k, shape, dtype=jnp.float32)

    p = {}
    p["w_in_r"] = rn(ks[0], (FC_DIM, IN_DIM))
    p["b_in_r"] = rn(ks[1], (FC_DIM,))
    p["w_in_i"] = rn(ks[2], (FC_DIM, IN_DIM))
    p["b_in_i"] = rn(ks[3], (FC_DIM,))
    p["prelu1"] = jnp.array(0.25, jnp.float32)
    p["wih_r"] = rn(ks[4], (3 * RNN_DIM, FC_DIM))
    p["whh_r"] = rn(ks[5], (3 * RNN_DIM, RNN_DIM))
    p["bih_r"] = rn(ks[6], (3 * RNN_DIM,))
    p["bhh_r"] = rn(ks[7], (3 * RNN_DIM,))
    p["wih_i"] = rn(ks[8], (3 * RNN_DIM, FC_DIM))
    p["whh_i"] = rn(ks[9], (3 * RNN_DIM, RNN_DIM))
    p["bih_i"] = rn(ks[10], (3 * RNN_DIM,))
    p["bhh_i"] = rn(ks[11], (3 * RNN_DIM,))
    p["w_o1_r"] = rn(ks[12], (FC_DIM, RNN_DIM))
    p["b_o1_r"] = rn(ks[13], (FC_DIM,))
    p["w_o1_i"] = rn(ks[14], (FC_DIM, RNN_DIM))
    p["b_o1_i"] = rn(ks[15], (FC_DIM,))
    p["prelu2"] = jnp.array(0.25, jnp.float32)
    p["w_o2_r"] = rn(ks[16], (L, FC_DIM))
    p["b_o2_r"] = rn(ks[17], (L,))
    p["w_o2_i"] = rn(ks[18], (L, FC_DIM))
    p["b_o2_i"] = rn(ks[19], (L,))
    return p


def pack_params(p):
    """Pack the 22 PyTorch tensors into 5 fused bf16 weight slabs (all biases
    folded via constant-one rows) + 2 PReLU scalars in SMEM. Done once."""
    H = RNN_DIM
    f32 = jnp.float32

    # fc_in: rows [f_r; f_i; 1-row; pad], cols [x_r; x_i; 1; pad]
    w_in = jnp.zeros((F_ROWS, X_ROWS), f32)
    w_in = w_in.at[0:H, 0:IN_DIM].set(p["w_in_r"])
    w_in = w_in.at[0:H, X_ONES].set(p["b_in_r"])
    w_in = w_in.at[H:2 * H, IN_DIM:2 * IN_DIM].set(p["w_in_i"])
    w_in = w_in.at[H:2 * H, X_ONES].set(p["b_in_i"])
    w_in = w_in.at[F_ONES, X_ONES].set(1.0)          # emit the ones row of f

    # GRU: gate-major rows [r|z|n], each gate = [rr|ir|ri|ii] x 18 (dense, no pad)
    w_ih = jnp.zeros((GATE_ROWS, F_ROWS), f32)       # cols: [f_r; f_i; 1; pad]
    w_hh = jnp.zeros((GATE_ROWS, H_ROWS), f32)       # cols: [Frr;Fir;Fri;Fii; 1; pad]
    eval_wih = (p["wih_r"], p["wih_r"], p["wih_i"], p["wih_i"])
    eval_whh = (p["whh_r"], p["whh_r"], p["whh_i"], p["whh_i"])
    eval_bih = (p["bih_r"], p["bih_r"], p["bih_i"], p["bih_i"])
    eval_bhh = (p["bhh_r"], p["bhh_r"], p["bhh_i"], p["bhh_i"])
    f_col = (0, H, 0, H)                              # rr/ri read f_r, ir/ii read f_i
    for g in range(3):                                # PyTorch gate order r, z, n
        for e in range(4):                            # eval order rr, ir, ri, ii
            r0 = g * GBLK + e * H
            w_ih = w_ih.at[r0:r0 + H, f_col[e]:f_col[e] + H].set(
                eval_wih[e][g * H:(g + 1) * H, :])
            w_ih = w_ih.at[r0:r0 + H, F_ONES].set(eval_bih[e][g * H:(g + 1) * H])
            w_hh = w_hh.at[r0:r0 + H, e * H:(e + 1) * H].set(
                eval_whh[e][g * H:(g + 1) * H, :])
            w_hh = w_hh.at[r0:r0 + H, H_ONES].set(eval_bhh[e][g * H:(g + 1) * H])

    # fc_out1 with complex recombination folded in:
    #   g_r = W_r@Frr - W_r@Fii + b_r ;  g_i = W_i@Fir + W_i@Fri + b_i
    w_o1 = jnp.zeros((G_ROWS, H_ROWS), f32)
    w_o1 = w_o1.at[0:H, 0:H].set(p["w_o1_r"])                 # Frr
    w_o1 = w_o1.at[0:H, 3 * H:4 * H].set(-p["w_o1_r"])        # -Fii
    w_o1 = w_o1.at[0:H, H_ONES].set(p["b_o1_r"])
    w_o1 = w_o1.at[H:2 * H, 1 * H:2 * H].set(p["w_o1_i"])     # Fir
    w_o1 = w_o1.at[H:2 * H, 2 * H:3 * H].set(p["w_o1_i"])     # Fri
    w_o1 = w_o1.at[H:2 * H, H_ONES].set(p["b_o1_i"])
    w_o1 = w_o1.at[G_ONES, H_ONES].set(1.0)                   # emit the ones row of g

    # fc_out2
    w_o2 = jnp.zeros((K_ROWS, G_ROWS), f32)
    w_o2 = w_o2.at[0:L, 0:H].set(p["w_o2_r"])
    w_o2 = w_o2.at[0:L, G_ONES].set(p["b_o2_r"])
    w_o2 = w_o2.at[L:2 * L, H:2 * H].set(p["w_o2_i"])
    w_o2 = w_o2.at[L:2 * L, G_ONES].set(p["b_o2_i"])

    bf16 = jnp.bfloat16
    return dict(w_in=w_in.astype(bf16), w_ih=w_ih.astype(bf16),
                w_hh=w_hh.astype(bf16), w_o1=w_o1.astype(bf16),
                w_o2=w_o2.astype(bf16),
                prelu=jnp.stack([p["prelu1"], p["prelu2"]]).astype(f32))


# ----------------------------------------------------------------------------
# wrapper: pack once -> stream in kernel layout -> unpack once
# ----------------------------------------------------------------------------
def _round_up(x, m):
    return (x + m - 1) // m * m


def _default_ntiles(B):
    """1 grid step on single-TC chips (v5e/v6e); 2 parallel steps on dual-TC
    chips (v7x / v4 / v5p) when there is more than one lane tile of batch."""
    if B <= LANE:
        return 1
    try:
        kind = jax.devices()[0].device_kind.lower()
    except Exception:
        return 1
    return 2 if any(t in kind for t in ("v7", "v4", "v5p")) else 1


def pack_inputs(in_real, in_imag, B_P):
    """PyTorch (B,1,9)+(B,1,9) -> packed (X_ROWS, B_P) with the ones row set."""
    B = in_real.shape[0]
    x = jnp.concatenate([in_real.reshape(B, IN_DIM).astype(jnp.float32),
                         in_imag.reshape(B, IN_DIM).astype(jnp.float32),
                         jnp.ones((B, 1), jnp.float32)], axis=1)       # (B, 19)
    x = jnp.pad(x, ((0, B_P - B), (0, X_ROWS - x.shape[1])))
    return x.T                                                          # (X_ROWS, B_P)


def pack_hidden(h_rr, h_ir, h_ri, h_ii, B_P):
    """PyTorch 4x(1,B,18) -> packed (H_ROWS, B_P) with the ones row set."""
    B = h_rr.shape[1]
    h = jnp.concatenate([hh.reshape(B, RNN_DIM).astype(jnp.float32)
                         for hh in (h_rr, h_ir, h_ri, h_ii)]
                        + [jnp.ones((B, 1), jnp.float32)], axis=1)      # (B, 73)
    h = jnp.pad(h, ((0, B_P - B), (0, H_ROWS - h.shape[1])))
    return h.T                                                          # (H_ROWS, B_P)


def unpack_outputs(k_packed, h_packed, B):
    """Packed kernel outputs -> PyTorch layouts (done once at the end)."""
    kg_real = k_packed[0:L, 0:B].T[:, :, None]                          # (B, L, 1)
    kg_imag = k_packed[L:2 * L, 0:B].T[:, :, None]                      # (B, L, 1)
    hs = tuple(h_packed[e * RNN_DIM:(e + 1) * RNN_DIM, 0:B].T[None]     # (1, B, 18)
               for e in range(4))
    return (kg_real, kg_imag) + hs


def _nkf_pallas(x_stack, h_stack, packed, *, ntiles):
    """One NKF step entirely in the packed lane-major layout."""
    B_P = x_stack.shape[1]
    TB = B_P // ntiles

    def dspec(rows):
        return pl.BlockSpec((rows, TB), lambda i: (0, i))

    def wspec(arr):
        return pl.BlockSpec(arr.shape, lambda i: (0, 0))

    in_specs = [
        dspec(X_ROWS),                                        # x_stack (lane-tiled)
        dspec(H_ROWS),                                        # h_stack (lane-tiled)
        wspec(packed["w_in"]), wspec(packed["w_ih"]), wspec(packed["w_hh"]),
        wspec(packed["w_o1"]), wspec(packed["w_o2"]),
        pl.BlockSpec(memory_space=pltpu.MemorySpace.SMEM),    # PReLU slopes (2,)
    ]
    out_specs = (dspec(K_ROWS), dspec(H_ROWS))
    out_shape = (jax.ShapeDtypeStruct((K_ROWS, B_P), jnp.float32),
                 jax.ShapeDtypeStruct((H_ROWS, B_P), jnp.float32))

    return pl.pallas_call(
        nkf_kernel,
        out_shape=out_shape,
        grid_spec=pltpu.PrefetchScalarGridSpec(
            num_scalar_prefetch=0, grid=(ntiles,),
            in_specs=in_specs, out_specs=out_specs),
        input_output_aliases={1: 1},                          # h in -> h out buffer
        compiler_params=pltpu.CompilerParams(
            dimension_semantics=("parallel",)),
    )(x_stack, h_stack, packed["w_in"], packed["w_ih"], packed["w_hh"],
      packed["w_o1"], packed["w_o2"], packed["prelu"])


def nkf_forward(packed, in_real, in_imag, h_rr, h_ir, h_ri, h_ii, *, ntiles=None):
    """One-shot convenience path (pack -> kernel -> unpack), PyTorch layouts."""
    B = in_real.shape[0]
    if ntiles is None:
        ntiles = _default_ntiles(B)
    B_P = _round_up(B, LANE * ntiles)
    x = pack_inputs(in_real, in_imag, B_P)
    h = pack_hidden(h_rr, h_ir, h_ri, h_ii, B_P)
    k_pack, h_pack = _nkf_pallas(x, h, packed, ntiles=ntiles)
    return unpack_outputs(k_pack, h_pack, B)


# ----------------------------------------------------------------------------
# pure-JAX f32 reference matching the PyTorch module
# ----------------------------------------------------------------------------
def nkf_reference(p, in_real, in_imag, h_rr, h_ir, h_ri, h_ii):
    B = in_real.shape[0]
    x_r = in_real.reshape(B, IN_DIM)
    x_i = in_imag.reshape(B, IN_DIM)

    def prelu(x, a):
        return jnp.where(x >= 0, x, a * x)

    def gru(x, h, wih, whh, bih, bhh):
        gi = x @ wih.T + bih
        gh = h @ whh.T + bhh
        H = RNN_DIM
        r = jax.nn.sigmoid(gi[:, :H] + gh[:, :H])
        z = jax.nn.sigmoid(gi[:, H:2 * H] + gh[:, H:2 * H])
        n = jnp.tanh(gi[:, 2 * H:] + r * gh[:, 2 * H:])
        return (1.0 - z) * n + z * h

    f_r = prelu(x_r @ p["w_in_r"].T + p["b_in_r"], p["prelu1"])
    f_i = prelu(x_i @ p["w_in_i"].T + p["b_in_i"], p["prelu1"])
    hrr0, hir0, hri0, hii0 = (h.reshape(B, RNN_DIM) for h in (h_rr, h_ir, h_ri, h_ii))
    Frr = gru(f_r, hrr0, p["wih_r"], p["whh_r"], p["bih_r"], p["bhh_r"])
    Fir = gru(f_i, hir0, p["wih_r"], p["whh_r"], p["bih_r"], p["bhh_r"])
    Fri = gru(f_r, hri0, p["wih_i"], p["whh_i"], p["bih_i"], p["bhh_i"])
    Fii = gru(f_i, hii0, p["wih_i"], p["whh_i"], p["bih_i"], p["bhh_i"])
    y_r, y_i = Frr - Fii, Fri + Fir
    g_r = prelu(y_r @ p["w_o1_r"].T + p["b_o1_r"], p["prelu2"])
    g_i = prelu(y_i @ p["w_o1_i"].T + p["b_o1_i"], p["prelu2"])
    k_r = g_r @ p["w_o2_r"].T + p["b_o2_r"]
    k_i = g_i @ p["w_o2_i"].T + p["b_o2_i"]
    return (k_r[:, :, None], k_i[:, :, None],
            Frr[None], Fir[None], Fri[None], Fii[None])


if __name__ == "__main__":
    key = jax.random.PRNGKey(0)
    kp, kd = jax.random.split(key)
    params = init_params(kp)
    packed = pack_params(params)

    B = 64      # small stand-in for the 513 frequency bins of the reference
    T = 3       # a few streaming frames to exercise the persistent packed hidden
    ks = jax.random.split(kd, 2 * T + 4)
    xs_r = [jax.random.normal(ks[2 * t], (B, 1, IN_DIM), jnp.float32) for t in range(T)]
    xs_i = [jax.random.normal(ks[2 * t + 1], (B, 1, IN_DIM), jnp.float32) for t in range(T)]
    h_rr = jax.random.normal(ks[2 * T + 0], (1, B, RNN_DIM), jnp.float32)
    h_ir = jax.random.normal(ks[2 * T + 1], (1, B, RNN_DIM), jnp.float32)
    h_ri = jax.random.normal(ks[2 * T + 2], (1, B, RNN_DIM), jnp.float32)
    h_ii = jax.random.normal(ks[2 * T + 3], (1, B, RNN_DIM), jnp.float32)

    ntiles = _default_ntiles(B)
    B_P = _round_up(B, LANE * ntiles)
    step_fn = jax.jit(functools.partial(_nkf_pallas, ntiles=ntiles))

    # Streaming loop: hidden state stays in the packed kernel layout throughout.
    h_pack = pack_hidden(h_rr, h_ir, h_ri, h_ii, B_P)
    k_pack = None
    for t in range(T):
        x_pack = pack_inputs(xs_r[t], xs_i[t], B_P)
        k_pack, h_pack = step_fn(x_pack, h_pack, packed)
    k_pack = jax.block_until_ready(k_pack)
    h_pack = jax.block_until_ready(h_pack)
    outs = unpack_outputs(k_pack, h_pack, B)
    assert outs[0].shape == (B, L, 1) and outs[2].shape == (1, B, RNN_DIM)

    # f32 reference iterated the same number of steps.
    refs = None
    h_state = (h_rr, h_ir, h_ri, h_ii)
    for t in range(T):
        refs = nkf_reference(params, xs_r[t], xs_i[t], *h_state)
        h_state = refs[2:]

    # bf16 MXU inputs -> compare with a correspondingly relaxed tolerance.
    for o, r in zip(outs, refs):
        err = float(jnp.max(jnp.abs(o - r)))
        assert jnp.allclose(o, r, atol=2e-2, rtol=2e-2), err

    print("KERNEL_OK")
</pallas_src>

<mosaic_0001>
module attributes {stable_mosaic.version = 11 : i64} {
  func.func @nkf_kernel(%arg0: i32, %arg1: memref<24x128xf32, #tpu.memory_space<vmem>>, %arg2: memref<80x128xf32, #tpu.memory_space<vmem>>, %arg3: memref<40x24xbf16, #tpu.memory_space<vmem>>, %arg4: memref<216x40xbf16, #tpu.memory_space<vmem>>, %arg5: memref<216x80xbf16, #tpu.memory_space<vmem>>, %arg6: memref<40x80xbf16, #tpu.memory_space<vmem>>, %arg7: memref<8x40xbf16, #tpu.memory_space<vmem>>, %arg8: memref<2xf32, #tpu.memory_space<smem>>, %arg9: memref<8x128xf32, #tpu.memory_space<vmem>>, %arg10: memref<80x128xf32, #tpu.memory_space<vmem>>) attributes {dimension_semantics = [#tpu.dimension_semantics<parallel>], iteration_bounds = array<i64: 1>, scalar_prefetch = 0 : i64, scratch_operands = 0 : i64, tpu.core_type = #tpu.core_type<tc>, window_params = [{transform_indices = @transform_0, window_bounds = array<i64: 24, 128>}, {transform_indices = @transform_1, window_bounds = array<i64: 80, 128>}, {pipeline_mode = #tpu.pipeline_mode<synchronous>, transform_indices = @transform_2, window_bounds = array<i64: 40, 24>}, {pipeline_mode = #tpu.pipeline_mode<synchronous>, transform_indices = @transform_3, window_bounds = array<i64: 216, 40>}, {pipeline_mode = #tpu.pipeline_mode<synchronous>, transform_indices = @transform_4, window_bounds = array<i64: 216, 80>}, {pipeline_mode = #tpu.pipeline_mode<synchronous>, transform_indices = @transform_5, window_bounds = array<i64: 40, 80>}, {pipeline_mode = #tpu.pipeline_mode<synchronous>, transform_indices = @transform_6, window_bounds = array<i64: 8, 40>}, {transform_indices = @transform_7, window_bounds = array<i64: 2>}, {transform_indices = @transform_8, window_bounds = array<i64: 8, 128>}, {transform_indices = @transform_9, window_bounds = array<i64: 80, 128>}]} {
    %c0 = arith.constant 0 : index
    %c0_0 = arith.constant 0 : index
    %0 = vector.load %arg2[%c0, %c0_0] : memref<80x128xf32, #tpu.memory_space<vmem>>, vector<80x128xf32>
    %c0_1 = arith.constant 0 : index
    %1 = memref.load %arg8[%c0_1] : memref<2xf32, #tpu.memory_space<smem>>
    %c1 = arith.constant 1 : index
    %2 = memref.load %arg8[%c1] : memref<2xf32, #tpu.memory_space<smem>>
    %c0_2 = arith.constant 0 : index
    %c0_3 = arith.constant 0 : index
    %3 = vector.load %arg1[%c0_2, %c0_3] : memref<24x128xf32, #tpu.memory_space<vmem>>, vector<24x128xf32>
    %c0_4 = arith.constant 0 : index
    %c0_5 = arith.constant 0 : index
    %4 = vector.load %arg3[%c0_4, %c0_5] : memref<40x24xbf16, #tpu.memory_space<vmem>>, vector<40x24xbf16>
    %5 = arith.truncf %3 : vector<24x128xf32> to vector<24x128xbf16>
    %cst = arith.constant dense<0.000000e+00> : vector<40x128xf32>
    %6 = tpu.matmul %4, %5, %cst {dimension_numbers = #tpu.dot_dimension_numbers<[1], [0], [0], [1], [0, 0, 1, 1], [], []>} : vector<40x24xbf16>, vector<24x128xbf16>, vector<40x128xf32> -> vector<40x128xf32>
    %cst_6 = arith.constant 0.000000e+00 : f32
    %7 = vector.broadcast %cst_6 : f32 to vector<40x128xf32>
    %8 = arith.cmpf oge, %6, %7 : vector<40x128xf32>
    %9 = vector.broadcast %1 : f32 to vector<40x128xf32>
    %10 = arith.mulf %9, %6 : vector<40x128xf32>
    %11 = arith.select %8, %6, %10 : vector<40x128xi1>, vector<40x128xf32>
    %c0_7 = arith.constant 0 : index
    %c0_8 = arith.constant 0 : index
    %12 = vector.load %arg4[%c0_7, %c0_8] : memref<216x40xbf16, #tpu.memory_space<vmem>>, vector<216x40xbf16>
    %13 = arith.truncf %11 : vector<40x128xf32> to vector<40x128xbf16>
    %cst_9 = arith.constant dense<0.000000e+00> : vector<216x128xf32>
    %14 = tpu.matmul %12, %13, %cst_9 {dimension_numbers = #tpu.dot_dimension_numbers<[1], [0], [0], [1], [0, 0, 1, 1], [], []>} : vector<216x40xbf16>, vector<40x128xbf16>, vector<216x128xf32> -> vector<216x128xf32>
    %c0_10 = arith.constant 0 : index
    %c0_11 = arith.constant 0 : index
    %15 = vector.load %arg5[%c0_10, %c0_11] : memref<216x80xbf16, #tpu.memory_space<vmem>>, vector<216x80xbf16>
    %16 = arith.truncf %0 : vector<80x128xf32> to vector<80x128xbf16>
    %cst_12 = arith.constant dense<0.000000e+00> : vector<216x128xf32>
    %17 = tpu.matmul %15, %16, %cst_12 {dimension_numbers = #tpu.dot_dimension_numbers<[1], [0], [0], [1], [0, 0, 1, 1], [], []>} : vector<216x80xbf16>, vector<80x128xbf16>, vector<216x128xf32> -> vector<216x128xf32>
    %18 = vector.extract_strided_slice %14 {offsets = [0, 0], sizes = [72, 128], strides = [1, 1]} : vector<216x128xf32> to vector<72x128xf32>
    %19 = vector.extract_strided_slice %17 {offsets = [0, 0], sizes = [72, 128], strides = [1, 1]} : vector<216x128xf32> to vector<72x128xf32>
    %20 = arith.addf %18, %19 : vector<72x128xf32>
    %21 = arith.negf %20 : vector<72x128xf32>
    %22 = math.exp %21 : vector<72x128xf32>
    %cst_13 = arith.constant 1.000000e+00 : f32
    %23 = vector.broadcast %cst_13 : f32 to vector<72x128xf32>
    %24 = arith.addf %23, %22 : vector<72x128xf32>
    %25 = arith.divf %23, %24 : vector<72x128xf32>
    %26 = vector.extract_strided_slice %14 {offsets = [72, 0], sizes = [72, 128], strides = [1, 1]} : vector<216x128xf32> to vector<72x128xf32>
    %27 = vector.extract_strided_slice %17 {offsets = [72, 0], sizes = [72, 128], strides = [1, 1]} : vector<216x128xf32> to vector<72x128xf32>
    %28 = arith.addf %26, %27 : vector<72x128xf32>
    %29 = arith.negf %28 : vector<72x128xf32>
    %30 = math.exp %29 : vector<72x128xf32>
    %cst_14 = arith.constant 1.000000e+00 : f32
    %31 = vector.broadcast %cst_14 : f32 to vector<72x128xf32>
    %32 = arith.addf %31, %30 : vector<72x128xf32>
    %33 = arith.divf %31, %32 : vector<72x128xf32>
    %34 = vector.extract_strided_slice %14 {offsets = [144, 0], sizes = [72, 128], strides = [1, 1]} : vector<216x128xf32> to vector<72x128xf32>
    %35 = vector.extract_strided_slice %17 {offsets = [144, 0], sizes = [72, 128], strides = [1, 1]} : vector<216x128xf32> to vector<72x128xf32>
    %36 = arith.mulf %25, %35 : vector<72x128xf32>
    %37 = arith.addf %34, %36 : vector<72x128xf32>
    %38 = math.tanh %37 : vector<72x128xf32>
    %cst_15 = arith.constant 1.000000e+00 : f32
    %39 = vector.broadcast %cst_15 : f32 to vector<72x128xf32>
    %40 = arith.subf %39, %33 : vector<72x128xf32>
    %41 = arith.mulf %40, %38 : vector<72x128xf32>
    %42 = vector.extract_strided_slice %0 {offsets = [0, 0], sizes = [72, 128], strides = [1, 1]} : vector<80x128xf32> to vector<72x128xf32>
    %43 = arith.mulf %33, %42 : vector<72x128xf32>
    %44 = arith.addf %41, %43 : vector<72x128xf32>
    %45 = vector.extract_strided_slice %0 {offsets = [72, 0], sizes = [8, 128], strides = [1, 1]} : vector<80x128xf32> to vector<8x128xf32>
    %46 = tpu.concatenate %44, %45 in 0 : vector<72x128xf32>, vector<8x128xf32> -> vector<80x128xf32>
    %c0_16 = arith.constant 0 : index
    %c0_17 = arith.constant 0 : index
    %47 = vector.load %arg6[%c0_16, %c0_17] : memref<40x80xbf16, #tpu.memory_space<vmem>>, vector<40x80xbf16>
    %48 = arith.truncf %46 : vector<80x128xf32> to vector<80x128xbf16>
    %cst_18 = arith.constant dense<0.000000e+00> : vector<40x128xf32>
    %49 = tpu.matmul %47, %48, %cst_18 {dimension_numbers = #tpu.dot_dimension_numbers<[1], [0], [0], [1], [0, 0, 1, 1], [], []>} : vector<40x80xbf16>, vector<80x128xbf16>, vector<40x128xf32> -> vector<40x128xf32>
    %cst_19 = arith.constant 0.000000e+00 : f32
    %50 = vector.broadcast %cst_19 : f32 to vector<40x128xf32>
    %51 = arith.cmpf oge, %49, %50 : vector<40x128xf32>
    %52 = vector.broadcast %2 : f32 to vector<40x128xf32>
    %53 = arith.mulf %52, %49 : vector<40x128xf32>
    %54 = arith.select %51, %49, %53 : vector<40x128xi1>, vector<40x128xf32>
    %c0_20 = arith.constant 0 : index
    %c0_21 = arith.constant 0 : index
    %55 = vector.load %arg7[%c0_20, %c0_21] : memref<8x40xbf16, #tpu.memory_space<vmem>>, vector<8x40xbf16>
    %56 = arith.truncf %54 : vector<40x128xf32> to vector<40x128xbf16>
    %cst_22 = arith.constant dense<0.000000e+00> : vector<8x128xf32>
    %57 = tpu.matmul %55, %56, %cst_22 {dimension_numbers = #tpu.dot_dimension_numbers<[1], [0], [0], [1], [0, 0, 1, 1], [], []>} : vector<8x40xbf16>, vector<40x128xbf16>, vector<8x128xf32> -> vector<8x128xf32>
    %c0_23 = arith.constant 0 : index
    %c0_24 = arith.constant 0 : index
    %58 = vector.load %arg9[%c0_23, %c0_24] : memref<8x128xf32, #tpu.memory_space<vmem>>, vector<8x128xf32>
    tpu.vector_store %arg9[%c0_23, %c0_24], %57 {strides = array<i32>} : memref<8x128xf32, #tpu.memory_space<vmem>>, vector<8x128xf32>,
    %c0_25 = arith.constant 0 : index
    %c0_26 = arith.constant 0 : index
    %59 = vector.load %arg10[%c0_25, %c0_26] : memref<80x128xf32, #tpu.memory_space<vmem>>, vector<80x128xf32>
    tpu.vector_store %arg10[%c0_25, %c0_26], %46 {strides = array<i32>} : memref<80x128xf32, #tpu.memory_space<vmem>>, vector<80x128xf32>,
    return
  }
  func.func @transform_0(%arg0: i32) -> (i32, i32) {
    %c0_i32 = arith.constant 0 : i32
    %c0_i32_0 = arith.constant 0 : i32
    return %c0_i32, %arg0 : i32, i32
  }
  func.func @transform_1(%arg0: i32) -> (i32, i32) {
    %c0_i32 = arith.constant 0 : i32
    %c0_i32_0 = arith.constant 0 : i32
    return %c0_i32, %arg0 : i32, i32
  }
  func.func @transform_2(%arg0: i32) -> (i32, i32) {
    %c0_i32 = arith.constant 0 : i32
    %c0_i32_0 = arith.constant 0 : i32
    %c0_i32_1 = arith.constant 0 : i32
    return %c0_i32, %c0_i32_0 : i32, i32
  }
  func.func @transform_3(%arg0: i32) -> (i32, i32) {
    %c0_i32 = arith.constant 0 : i32
    %c0_i32_0 = arith.constant 0 : i32
    %c0_i32_1 = arith.constant 0 : i32
    return %c0_i32, %c0_i32_0 : i32, i32
  }
  func.func @transform_4(%arg0: i32) -> (i32, i32) {
    %c0_i32 = arith.constant 0 : i32
    %c0_i32_0 = arith.constant 0 : i32
    %c0_i32_1 = arith.constant 0 : i32
    return %c0_i32, %c0_i32_0 : i32, i32
  }
  func.func @transform_5(%arg0: i32) -> (i32, i32) {
    %c0_i32 = arith.constant 0 : i32
    %c0_i32_0 = arith.constant 0 : i32
    %c0_i32_1 = arith.constant 0 : i32
    return %c0_i32, %c0_i32_0 : i32, i32
  }
  func.func @transform_6(%arg0: i32) -> (i32, i32) {
    %c0_i32 = arith.constant 0 : i32
    %c0_i32_0 = arith.constant 0 : i32
    %c0_i32_1 = arith.constant 0 : i32
    return %c0_i32, %c0_i32_0 : i32, i32
  }
  func.func @transform_7(%arg0: i32) -> i32 {
    %c0_i32 = arith.constant 0 : i32
    %c0_i32_0 = arith.constant 0 : i32
    return %c0_i32 : i32
  }
  func.func @transform_8(%arg0: i32) -> (i32, i32) {
    %c0_i32 = arith.constant 0 : i32
    %c0_i32_0 = arith.constant 0 : i32
    return %c0_i32, %arg0 : i32, i32
  }
  func.func @transform_9(%arg0: i32) -> (i32, i32) {
    %c0_i32 = arith.constant 0 : i32
    %c0_i32_0 = arith.constant 0 : i32
    return %c0_i32, %arg0 : i32, i32
  }
}

</mosaic_0001>

<bundles_post_ra>
// kernel: _nkf_pallas.1
= control target key start
LH: loop header
LB: loop body
LE: loop exit
PB: predicated region body
PF: predicated region fallthrough
CT: control target
= control target key end

     0   :  { %15 = vsyncpa [#allocation3], 0  ;;  %s2010_s0 = inlined_call_operand.vmem [shape: f32[24,128], index: 0, kind: input, shape index: {}]   ;;  %s2011_s1 = inlined_call_operand.hbm [shape: f32[80,128], index: 1, kind: input, shape index: {}, may-alias: {1,9}]   ;;  %s2012_s2 = inlined_call_operand.vmem [shape: bf16[40,24], index: 2, kind: input, shape index: {}]   ;;  %s2013_s3 = inlined_call_operand.vmem [shape: bf16[216,40], index: 3, kind: input, shape index: {}]   ;;  %s2014_s4 = inlined_call_operand.vmem [shape: bf16[216,80], index: 4, kind: input, shape index: {}]   ;;  %s2015_s5 = inlined_call_operand.vmem [shape: bf16[40,80], index: 5, kind: input, shape index: {}]   ;;  %s2016_s6 = inlined_call_operand.vmem [shape: bf16[8,40], index: 6, kind: input, shape index: {}]   ;;  %s2017_s7 = inlined_call_operand.vmem [shape: f32[2], index: 7, kind: input, shape index: {}]   ;;  %s2018_s8 = inlined_call_operand.hbm [shape: f32[8,128], index: 8, kind: output, shape index: {0}]   ;;  %s2019_s9 = inlined_call_operand.hbm [shape: f32[80,128], index: 9, kind: output, shape index: {1}, may-alias: {1,9}]  }
   0x1   :  { %16 = vsyncpa [#allocation5], 0 }
   0x2   :  { %17 = vsyncpa [#allocation4], 0 }
   0x3   :  { %18 = vsyncpa [#allocation9], 0  ;;  %s1646_s30 = smov [#allocation2]   ;;  %s49_s13 = sshll.u32 %s2017_s7, 4  ;;  %s50_s13 = int_to_ptr.vmem [resolvable:$true] %s49_s13 }
   0x4   :  { %s26_s10 = sshll.u32 %s1646_s30, 4  ;;  %s1560_s16 = scalar_lea.hbm %s2011_s1, 1280  ;;  %s27_s10 = int_to_ptr.vmem [resolvable:$true] %s26_s10 }
   0x5   :  { %p1561_p0 = scmp.ne.s32.totalorder %s2011_s1, %s1560_s16  ;;  %p1564_p1 = scmp.lt.u32.totalorder %s1560_s16, %s2011_s1 }
   0x7   :  { %p1566_p2 = pnand %p1564_p1, %p1561_p0 }
   0x9   :  { %1569 = shalt.err (!%p1566_p2)
}
   0xa   :  { %s1570_s21 = scalar_lea.vmem %s27_s10, 1280  ;;  %p1575_p4 = scmp.lt.s32.totalorder %s27_s10, %s27_s10 }
   0xb   :  { %p1571_p3 = scmp.ne.s32.totalorder %s27_s10, %s1570_s21  ;;  %p1576_p5 = scmp.lt.s32.totalorder %s1570_s21, %s1570_s21 }
   0xd   :  { %p1577_p6 = por %p1576_p5, %p1575_p4 }
   0xf   :  { %p1578_p7 = pnand %p1577_p6, %p1571_p3 }
  0x11   :  { %1581 = shalt.err (!%p1578_p7)
}
  0x12   :  { %s1647_s7 = smov 128   ;;  %s1648_s22 = smov 8  }
  0x13   :  { %32 = dma.hbm_to_vmem [thread:$0]  %s2011_s1, 1280, %s27_s10, [#allocation3], %s1647_s7, %s1647_s7, %s1648_s22  }
  0x14   :  { %s1582_s25 = scalar_lea.vmem %s50_s13, 16  ;;  %p1587_p9 = scmp.lt.s32.totalorder %s50_s13, %s50_s13 }
  0x15   :  { %p1583_p8 = scmp.ne.s32.totalorder %s50_s13, %s1582_s25  ;;  %p1588_p10 = scmp.lt.s32.totalorder %s1582_s25, %s1582_s25 }
  0x17   :  { %p1589_p11 = por %p1588_p10, %p1587_p9 }
  0x19   :  { %p1590_p12 = pnand %p1589_p11, %p1583_p8 }
  0x1b   :  { %1593 = shalt.err (!%p1590_p12)
}
  0x1c   :  { %s1649_s26 = smov [#allocation6]  }
  0x1d   :  { %52 = dma.vmem_to_smem %s50_s13, 16, %s1649_s26, [#allocation5]  }
  0x1e   :  { %1638 = dma.done.wait [#allocation3], 1280  }
  0x1f   :  { %1639 = vsyncadd [#allocation3], 4294966016 }
  0x20   :  { %1640 = dma.done.wait [#allocation5], 16  }
  0x21   :  { %1641 = vsyncadd [#allocation5], 4294967280 }
  0x22   :  { %59 = sfence }
  0x23   :  { %v73_v0 = vld [vmem:[%s2010_s0] sm:$0xff]  ;;  %v74_v1 = vld [vmem:[%s2010_s0 + $0x8] sm:$0xff]  ;;  %v75_v2 = vld [vmem:[%s2010_s0 + $0x10] sm:$0xff]  ;;  %v1650_v3 = vmov 0.0   ;;  %vm106_vm0 = vcmask 1043456   ;;  %vm1651_vm1 = vmmov 0  }
  0x24   :  { %1284 = vmatprep.subr.bf16.mxu0 %v1650_v3  ;;  %v81_v4 = vpack.c.bf16 %v74_v1, %v73_v0  ;;  %v82_v5 = vpack.c.bf16 %v75_v2, %v75_v2  ;;  %1288 = vmatprep.mubr.msk.bf16.mxu0 %vm1651_vm1, %v1650_v3  ;;  %v1436_v7 = vld [vmem:[%s2012_s2] sm:$0xff]   ;;  %vm96_vm2 = vcmask 195584   ;;  %v1437_v8 = vld [vmem:[%s2012_s2 + $0x8] sm:$0xff]   ;;  %v1438_v9 = vld [vmem:[%s2012_s2 + $0x10] ss:$0 sps:$4 sm:$0xff]   ;;  %vm280_vm3 = vcmask 326656  }
  0x25   :  { %v1439_v10 = vld [vmem:[%s2013_s3 + $0x40] sm:$0xff]   ;;  %v1753_v11 = vld [vmem:[#allocation2 + $0x48] sm:$0xff]  ;;  %s71_s20 = sld [smem:[#allocation6]]  ;;  %v1766_v42 = vld [vmem:[#allocation2 + $0x10] sm:$0xff]  ;;  %vm570_vm9 = vcmask 654336   ;;  %s1143_s30 = sld [smem:[#allocation6 + $0x1]] }
  0x26   :  { %1285 = vmatpush3.bf16.msra.mxu0 %v81_v4  ;;  %v108_v6 = vsel %vm106_vm0, %v82_v5, 0  ;;  %1322 = vmatprep.mubr.msk.bf16.mxu1 %vm280_vm3, %v1439_v10  ;;  %1110 = vst [vmem:[#allocation8 + $0x48] sm:$0xff] %v1753_v11  ;;  %v1445_v12 = vld [vmem:[%s2013_s3] sm:$0xff]   ;;  %v1762_v36 = vld [vmem:[#allocation2 + $0x8] sm:$0xff]  ;;  %v1768_v43 = vld [vmem:[#allocation2 + $0x18] sm:$0xff]  ;;  %s1652_s10 = smov [#allocation8]  }
  0x27   :  { %1286 = vmatprep.subr.bf16.mxu0 %v1650_v3  ;;  %v1760_v35 = vld [vmem:[#allocation2] sm:$0xff]  ;;  %v1440_v45 = vld [vmem:[%s2013_s3 + $0x48] sm:$0xff]   ;;  %v1441_v47 = vld [vmem:[%s2013_s3 + $0x50] sm:$0xff]   ;;  %v498_v48 = vpack.c.bf16 %v1768_v43, %v1766_v42  ;;  %s1126_s11 = sshll.u32 %s1652_s10, 4  ;;  %s1127_s11 = int_to_ptr.vmem [resolvable:$true] %s1126_s11 }
  0x28   :  { %v497_v41 = vpack.c.bf16 %v1762_v36, %v1760_v35  ;;  %v1446_v46 = vld [vmem:[%s2013_s3 + $0x8] sm:$0xff]   ;;  %v1449_v49 = vld [vmem:[%s2013_s3 + $0x10] sm:$0xff]   ;;  %v1788_v50 = vld [vmem:[#allocation2 + $0x20] sm:$0xff]  ;;  %s1594_s12 = scalar_lea.vmem %s1127_s11, 1280  ;;  %p1599_p0 = scmp.lt.s32.totalorder %s1127_s11, %s1127_s11 }
  0x29   :  { %v1790_v51 = vld [vmem:[#allocation2 + $0x28] sm:$0xff]  ;;  %v1798_v53 = vld [vmem:[#allocation2 + $0x30] sm:$0xff]  ;;  %v1800_v54 = vld [vmem:[#allocation2 + $0x38] sm:$0xff]  ;;  %p1595_p13 = scmp.ne.s32.totalorder %s1127_s11, %s1594_s12  ;;  %p1600_p1 = scmp.lt.s32.totalorder %s1594_s12, %s1594_s12 }
  0x2a   :  { %1287 = vmatpush3.bf16.msra.mxu0 %v108_v6  ;;  %v499_v52 = vpack.c.bf16 %v1790_v51, %v1788_v50  ;;  %v1442_v55 = vld [vmem:[%s2013_s3 + $0x58] sm:$0xff]   ;;  %v1443_v57 = vld [vmem:[%s2013_s3 + $0x60] sm:$0xff]   ;;  %v500_v58 = vpack.c.bf16 %v1800_v54, %v1798_v53  ;;  %v1444_v62 = vld [vmem:[%s2013_s3 + $0x68] ss:$0 sps:$4 sm:$0xff]  }
  0x2b   :  { %v171_v13 = vstv %s71_s20  ;;  %v1450_v56 = vld [vmem:[%s2013_s3 + $0x18] sm:$0xff]   ;;  %v1453_v59 = vld [vmem:[%s2013_s3 + $0x20] sm:$0xff]   ;;  %v1454_v63 = vld [vmem:[%s2013_s3 + $0x28] sm:$0xff]   ;;  %p1601_p2 = por %p1600_p1, %p1599_p0 }
  0x2c   :  { %v1816_v60 = vld [vmem:[#allocation2 + $0x40] sm:$0xff]  ;;  %v1457_v1 = vld [vmem:[%s2013_s3 + $0x30] sm:$0xff]   ;;  %v1448_v2 = vld [vmem:[%s2014_s4 + $0x8] sm:$0xff]  }
  0x2d   :  { %1289 = vmatmul.mubr.msk.bf16.vlgmr.msra.gmra.mrb[0].mxu0 %vm96_vm2, %v1436_v7  ;;  %v501_v61 = vpack.c.bf16 %v1753_v11, %v1816_v60  ;;  %v1447_v0 = vld [vmem:[%s2014_s4] sm:$0xff]   ;;  %v1459_v4 = vld [vmem:[%s2013_s3 + $0x38] sm:$0xff]   ;;  %v1451_v5 = vld [vmem:[%s2014_s4 + $0x10] sm:$0xff]   ;;  %p1602_p3 = pnand %p1601_p2, %p1595_p13 }
  0x2e   :  { %1292 = vmatprep.mubr.msk.bf16.mxu0 %vm1651_vm1, %v1650_v3  ;;  %v1452_v6 = vld [vmem:[%s2014_s4 + $0x18] sm:$0xff]   ;;  %v1455_v7 = vld [vmem:[%s2014_s4 + $0x20] sm:$0xff]  }
  0x2f   :  { %v1460_v10 = vld [vmem:[%s2014_s4 + $0x38] sm:$0xff]  }
  0x35   :  { %1293 = vmatmul.mubr.msk.bf16.gmra.mrb[4].mxu0 %vm96_vm2, %v1437_v8  ;;  %v1456_v8 = vld [vmem:[%s2014_s4 + $0x28] sm:$0xff]  }
  0x36   :  { %1296 = vmatprep.mubr.msk.bf16.mxu0 %vm1651_vm1, %v1650_v3 }
  0x3d   :  { %1297 = vmatmul.mubr.msk.bf16.gmra.mrb[8].mxu0 %vm96_vm2, %v1438_v9  ;;  %v1458_v9 = vld [vmem:[%s2014_s4 + $0x30] sm:$0xff]  }
  0x3e   :  { %1306 = vmatprep.mubr.msk.bf16.mxu0 %vm280_vm3, %v1445_v12  ;;  %v1461_v12 = vld [vmem:[%s2014_s4 + $0x40] sm:$0xff]  }
 0x100   :  { %v144_v14 = vpop.f32.mrb[0].mxu0 }
 0x101   :  { %v172_v15 = vmul.f32 %v171_v13, %v144_v14  ;;  %v1290_v16 = vpop.f32.mrb[1].mxu0  ;;  %vm166_vm4 = vcmp.ge.f32.partialorder %v144_v14, 0.0 }
 0x102   :  { %v147_v17 = vpop.f32.mrb[2].mxu0  ;;  %v1465_v16 = vld [vmem:[%s2014_s4 + $0x60] sm:$0xff]  }
 0x103   :  { %vm167_vm5 = vcmp.ge.f32.partialorder %v147_v17, 0.0  ;;  %v173_v18 = vmul.f32 %v171_v13, %v147_v17  ;;  %v1291_v19 = vpop.f32.mrb[3].mxu0  ;;  %v177_v20 = vsel %vm166_vm4, %v144_v14, %v172_v15  ;;  %v1463_v14 = vld [vmem:[%s2014_s4 + $0x50] sm:$0xff]   ;;  %v1464_v15 = vld [vmem:[%s2014_s4 + $0x58] sm:$0xff]  }
 0x105   :  { %v178_v21 = vsel %vm167_vm5, %v147_v17, %v173_v18  ;;  %v1466_v17 = vld [vmem:[%s2014_s4 + $0x68] ss:$0 sps:$4 sm:$0xff]  }
 0x106   :  { %v209_v22 = vpack.c.bf16 %v178_v21, %v177_v20 }
 0x108   :  { %v152_v23 = vpop.f32.mrb[4].mxu0  ;;  %1300 = vmatprep.subr.bf16.mxu0 %v209_v22  ;;  %1404 = vmatprep.subr.bf16.mxu1 %v209_v22 }
 0x109   :  { %v174_v24 = vmul.f32 %v171_v13, %v152_v23  ;;  %v1294_v25 = vpop.f32.mrb[5].mxu0  ;;  %1301 = vmatpush3.bf16.msra.mxu0 %v209_v22  ;;  %1407 = vmatpush3.bf16.msra.mxu1 %v209_v22  ;;  %vm168_vm6 = vcmp.ge.f32.partialorder %v152_v23, 0.0 }
 0x10a   :  { %v155_v26 = vpop.f32.mrb[6].mxu0 }
 0x10b   :  { %vm169_vm7 = vcmp.ge.f32.partialorder %v155_v26, 0.0  ;;  %v175_v27 = vmul.f32 %v171_v13, %v155_v26  ;;  %v1295_v28 = vpop.f32.mrb[7].mxu0  ;;  %v179_v29 = vsel %vm168_vm6, %v152_v23, %v174_v24 }
 0x10d   :  { %v180_v30 = vsel %vm169_vm7, %v155_v26, %v175_v27 }
 0x10e   :  { %v210_v31 = vpack.c.bf16 %v180_v30, %v179_v29 }
 0x110   :  { %v160_v32 = vpop.f32.mrb[8].mxu0  ;;  %1302 = vmatprep.subr.bf16.mxu0 %v210_v31  ;;  %1405 = vmatprep.subr.bf16.mxu1 %v210_v31 }
 0x111   :  { %vm170_vm8 = vcmp.ge.f32.partialorder %v160_v32, 0.0  ;;  %v176_v33 = vmul.f32 %v171_v13, %v160_v32  ;;  %v1298_v34 = vpop.f32.mrb[9].mxu0  ;;  %1303 = vmatpush3.bf16.msra.mxu0 %v210_v31  ;;  %1408 = vmatpush3.bf16.msra.mxu1 %v210_v31  ;;  %v1462_v13 = vld [vmem:[%s2014_s4 + $0x48] sm:$0xff]  }
 0x112   :  { %v163_v37 = vpop.f32.mrb[10].mxu0 }
 0x113   :  { %v181_v38 = vsel %vm170_vm8, %v160_v32, %v176_v33  ;;  %v1299_v39 = vpop.f32.mrb[11].mxu0 }
 0x114   :  { %v211_v40 = vpack.c.bf16 %v181_v38, %v181_v38 }
 0x116   :  { %1426 = vmatprep.subr.msk.bf16.mxu0 %vm106_vm0, %v211_v40  ;;  %1427 = vmatprep.subr.msk.bf16.mxu1 %vm106_vm0, %v211_v40  ;;  %v324_v44 = vsel %vm106_vm0, %v211_v40, 0 }
 0x117   :  { %1305 = vmatpush3.bf16.msra.mxu0 %v324_v44  ;;  %1409 = vmatpush3.bf16.msra.mxu1 %v324_v44 }
 0x118   :  { %1334 = vmatprep.subr.bf16.mxu1 %v497_v41  ;;  %1372 = vmatprep.subr.bf16.mxu0 %v1650_v3 }
 0x11a   :  { %1323 = vmatmul.mubr.msk.bf16.vlgmr.msra.gmra.mrb[0].mxu1 %vm280_vm3, %v1440_v45  ;;  %1307 = vmatmul.mubr.msk.bf16.vlgmr.msra.gmra.mrb[12].mxu0 %vm280_vm3, %v1446_v46 }
 0x11b   :  { %1335 = vmatpush3.bf16.msra.mxu1 %v497_v41  ;;  %1326 = vmatprep.mubr.msk.bf16.mxu1 %vm280_vm3, %v1441_v47 }
 0x11c   :  { %1336 = vmatprep.subr.bf16.mxu1 %v498_v48  ;;  %1310 = vmatprep.mubr.msk.bf16.mxu0 %vm280_vm3, %v1449_v49 }
 0x11f   :  { %1337 = vmatpush3.bf16.msra.mxu1 %v498_v48 }
 0x120   :  { %1338 = vmatprep.subr.bf16.mxu1 %v499_v52 }
 0x122   :  { %1327 = vmatmul.mubr.msk.bf16.gmra.mrb[4].mxu1 %vm280_vm3, %v1442_v55  ;;  %1311 = vmatmul.mubr.msk.bf16.gmra.mrb[16].mxu0 %vm280_vm3, %v1450_v56 }
 0x123   :  { %1339 = vmatpush3.bf16.msra.mxu1 %v499_v52  ;;  %1330 = vmatprep.mubr.msk.bf16.mxu1 %vm280_vm3, %v1443_v57 }
 0x124   :  { %1340 = vmatprep.subr.bf16.mxu1 %v500_v58  ;;  %1314 = vmatprep.mubr.msk.bf16.mxu0 %vm280_vm3, %v1453_v59 }
 0x127   :  { %1341 = vmatpush3.bf16.msra.mxu1 %v500_v58 }
 0x128   :  { %1342 = vmatprep.subr.bf16.mxu1 %v501_v61 }
 0x12a   :  { %1331 = vmatmul.mubr.msk.bf16.gmra.mrb[8].mxu1 %vm280_vm3, %v1444_v62  ;;  %1315 = vmatmul.mubr.msk.bf16.gmra.mrb[20].mxu0 %vm280_vm3, %v1454_v63 }
 0x12b   :  { %1343 = vmatpush3.bf16.msra.mxu1 %v501_v61  ;;  %1344 = vmatprep.mubr.msk.bf16.mxu1 %vm570_vm9, %v1447_v0 }
 0x12c   :  { %1318 = vmatprep.mubr.msk.bf16.mxu0 %vm280_vm3, %v1457_v1 }
 0x132   :  { %1345 = vmatmul.mubr.msk.bf16.vlgmr.msra.gmra.mrb[12].mxu1 %vm570_vm9, %v1448_v2  ;;  %1319 = vmatmul.mubr.msk.bf16.gmra.mrb[24].mxu0 %vm280_vm3, %v1459_v4 }
 0x133   :  { %1348 = vmatprep.mubr.msk.bf16.mxu1 %vm570_vm9, %v1451_v5  ;;  %1382 = vmatprep.mubr.msk.bf16.mxu0 %vm1651_vm1, %v1650_v3 }
 0x13a   :  { %1349 = vmatmul.mubr.msk.bf16.gmra.mrb[16].mxu1 %vm570_vm9, %v1452_v6 }
 0x13b   :  { %1352 = vmatprep.mubr.msk.bf16.mxu1 %vm570_vm9, %v1455_v7 }
 0x142   :  { %1353 = vmatmul.mubr.msk.bf16.gmra.mrb[20].mxu1 %vm570_vm9, %v1456_v8 }
 0x143   :  { %1356 = vmatprep.mubr.msk.bf16.mxu1 %vm570_vm9, %v1458_v9 }
 0x14a   :  { %1357 = vmatmul.mubr.msk.bf16.gmra.mrb[24].mxu1 %vm570_vm9, %v1460_v10 }
 0x14b   :  { %1360 = vmatprep.mubr.msk.bf16.mxu1 %vm570_vm9, %v1461_v12 }
 0x152   :  { %1361 = vmatmul.mubr.msk.bf16.gmra.mrb[28].mxu1 %vm570_vm9, %v1462_v13 }
 0x153   :  { %1364 = vmatprep.mubr.msk.bf16.mxu1 %vm570_vm9, %v1463_v14 }
 0x15a   :  { %1365 = vmatmul.mubr.msk.bf16.gmra.mrb[32].mxu1 %vm570_vm9, %v1464_v15 }
 0x15b   :  { %1368 = vmatprep.mubr.msk.bf16.mxu1 %vm570_vm9, %v1465_v16 }
 0x162   :  { %1369 = vmatmul.mubr.msk.bf16.gmra.mrb[36].mxu1 %vm570_vm9, %v1466_v17 }
 0x1ed   :  { %v1898_v18 = vpop.f32.mrb[0].mxu1  ;;  %v1308_v19 = vpop.f32.mrb[12].mxu0 }
 0x1ee   :  { %v1900_v20 = vpop.f32.mrb[1].mxu1  ;;  %v360_v21 = vpop.f32.mrb[13].mxu0 }
 0x1ef   :  { %v1902_v22 = vpop.f32.mrb[2].mxu1  ;;  %v1309_v23 = vpop.f32.mrb[14].mxu0 }
 0x1f0   :  { %v1904_v24 = vpop.f32.mrb[3].mxu1  ;;  %v363_v25 = vpop.f32.mrb[15].mxu0 }
 0x1f5   :  { %v1906_v26 = vpop.f32.mrb[4].mxu1  ;;  %v1312_v27 = vpop.f32.mrb[16].mxu0 }
 0x1f6   :  { %v1908_v28 = vpop.f32.mrb[5].mxu1  ;;  %v376_v29 = vpop.f32.mrb[17].mxu0 }
 0x1f7   :  { %v1910_v30 = vpop.f32.mrb[6].mxu1  ;;  %v1313_v31 = vpop.f32.mrb[18].mxu0 }
 0x1f8   :  { %v1912_v32 = vpop.f32.mrb[7].mxu1  ;;  %v379_v33 = vpop.f32.mrb[19].mxu0 }
 0x1fd   :  { %v1914_v34 = vpop.f32.mrb[8].mxu1  ;;  %v1316_v37 = vpop.f32.mrb[20].mxu0 }
 0x1fe   :  { %v1916_v38 = vpop.f32.mrb[9].mxu1  ;;  %v392_v39 = vpop.f32.mrb[21].mxu0 }
 0x1ff   :  { %v1333_v40 = vpop.f32.mrb[10].mxu1  ;;  %v1317_v41 = vpop.f32.mrb[22].mxu0 }
 0x200   :  { %v1918_v44 = vpop.f32.mrb[11].mxu1  ;;  %v395_v45 = vpop.f32.mrb[23].mxu0 }
 0x205   :  { %v1346_v46 = vpop.f32.mrb[12].mxu1  ;;  %v1920_v47 = vpop.f32.mrb[24].mxu0 }
 0x206   :  { %v759_v48 = vadd.f32 %v1346_v46, %v1308_v19  ;;  %v647_v49 = vpop.f32.mrb[13].mxu1  ;;  %v1922_v52 = vpop.f32.mrb[25].mxu0 }
 0x207   :  { %v757_v55 = vadd.f32 %v647_v49, %v360_v21  ;;  %v1347_v56 = vpop.f32.mrb[14].mxu1  ;;  %v1924_v57 = vpop.f32.mrb[26].mxu0 }
 0x208   :  { %v1208_v58 = vmul.f32 -1.442695, %v759_v48  ;;  %v760_v59 = vadd.f32 %v1347_v56, %v1309_v23  ;;  %v650_v61 = vpop.f32.mrb[15].mxu1  ;;  %v1926_v62 = vpop.f32.mrb[27].mxu0 }
 0x209   :  { %v1206_v63 = vmul.f32 -1.442695, %v757_v55  ;;  %v758_v0 = vadd.f32 %v650_v61, %v363_v25 }
 0x20a   :  { %1470 = vpow2.f32 %v1208_v58  ;;  %v1209_v1 = vmul.f32 -1.442695, %v760_v59 }
 0x20b   :  { %1472 = vpow2.f32 %v1206_v63  ;;  %v1207_v2 = vmul.f32 -1.442695, %v758_v0 }
 0x20d   :  { %1474 = vpow2.f32 %v1207_v2  ;;  %v1350_v4 = vpop.f32.mrb[16].mxu1 }
 0x20e   :  { %1476 = vpow2.f32 %v1209_v1  ;;  %v763_v5 = vadd.f32 %v1350_v4, %v1312_v27  ;;  %v663_v6 = vpop.f32.mrb[17].mxu1 }
 0x20f   :  { %v761_v7 = vadd.f32 %v663_v6, %v376_v29  ;;  %v1351_v8 = vpop.f32.mrb[18].mxu1 }
 0x210   :  { %v1212_v9 = vmul.f32 -1.442695, %v763_v5  ;;  %v764_v10 = vadd.f32 %v1351_v8, %v1313_v31  ;;  %v666_v12 = vpop.f32.mrb[19].mxu1 }
 0x211   :  { %v1210_v13 = vmul.f32 -1.442695, %v761_v7  ;;  %v762_v14 = vadd.f32 %v666_v12, %v379_v33 }
 0x212   :  { %1478 = vpow2.f32 %v1212_v9  ;;  %v1213_v15 = vmul.f32 -1.442695, %v764_v10 }
 0x213   :  { %1480 = vpow2.f32 %v1210_v13  ;;  %v1211_v16 = vmul.f32 -1.442695, %v762_v14 }
 0x214   :  { %v1471_v17 = vpop.eup %1470 }
 0x215   :  { %v1473_v19 = vpop.eup %1472  ;;  %v795_v21 = vadd.f32 1.0, %v1471_v17  ;;  %1482 = vpow2.f32 %v1211_v16  ;;  %v1354_v23 = vpop.f32.mrb[20].mxu1 }
 0x216   :  { %v793_v25 = vadd.f32 1.0, %v1473_v19  ;;  %1484 = vpow2.f32 %v1213_v15  ;;  %v821_v27 = vadd.f32 %v1354_v23, %v1316_v37  ;;  %v679_v40 = vpop.f32.mrb[21].mxu1 }
 0x217   :  { %v1475_v29 = vpop.eup %1474  ;;  %v765_v46 = vadd.f32 %v679_v40, %v392_v39  ;;  %v1355_v48 = vpop.f32.mrb[22].mxu1  ;;  %1486 = vrcp.f32 %v795_v21 }
 0x218   :  { %v1477_v31 = vpop.eup %1476  ;;  %v794_v49 = vadd.f32 1.0, %v1475_v29  ;;  %v1216_v33 = vmul.f32 -1.442695, %v821_v27  ;;  %v822_v55 = vadd.f32 %v1355_v48, %v1317_v41  ;;  %v682_v56 = vpop.f32.mrb[23].mxu1  ;;  %1488 = vrcp.f32 %v793_v25 }
 0x219   :  { %v1214_v58 = vmul.f32 -1.442695, %v765_v46  ;;  %v820_v59 = vadd.f32 %v682_v56, %v395_v45  ;;  %v796_v63 = vadd.f32 1.0, %v1477_v31 }
 0x21a   :  { %1490 = vrcp.f32 %v794_v49  ;;  %v1217_v61 = vmul.f32 -1.442695, %v822_v55 }
 0x21b   :  { %1492 = vpow2.f32 %v1216_v33  ;;  %v1215_v0 = vmul.f32 -1.442695, %v820_v59 }
 0x21c   :  { %v1479_v1 = vpop.eup %1478  ;;  %1494 = vpow2.f32 %v1214_v58 }
 0x21d   :  { %v1481_v37 = vpop.eup %1480  ;;  %v799_v2 = vadd.f32 1.0, %v1479_v1  ;;  %1496 = vpow2.f32 %v1217_v61  ;;  %v1358_v39 = vpop.f32.mrb[24].mxu1 }
 0x21e   :  { %v797_v4 = vadd.f32 1.0, %v1481_v37  ;;  %1498 = vpow2.f32 %v1215_v0  ;;  %v825_v5 = vadd.f32 %v1358_v39, %v1920_v47  ;;  %v695_v41 = vpop.f32.mrb[25].mxu1 }
 0x21f   :  { %v1483_v6 = vpop.eup %1482  ;;  %1500 = vrcp.f32 %v796_v63  ;;  %v823_v45 = vadd.f32 %v695_v41, %v1922_v52  ;;  %v1359_v7 = vpop.f32.mrb[26].mxu1 }
 0x220   :  { %v1485_v8 = vpop.eup %1484  ;;  %1502 = vrcp.f32 %v799_v2  ;;  %v798_v9 = vadd.f32 1.0, %v1483_v6  ;;  %v1220_v10 = vmul.f32 -1.442695, %v825_v5  ;;  %v826_v12 = vadd.f32 %v1359_v7, %v1924_v57  ;;  %v698_v13 = vpop.f32.mrb[27].mxu1 }
 0x221   :  { %1504 = vrcp.f32 %v797_v4  ;;  %v1218_v14 = vmul.f32 -1.442695, %v823_v45  ;;  %v824_v15 = vadd.f32 %v698_v13, %v1926_v62  ;;  %v1487_v16 = vpop.eup %1486  ;;  %v800_v19 = vadd.f32 1.0, %v1485_v8 }
 0x222   :  { %1506 = vrcp.f32 %v798_v9  ;;  %v1221_v47 = vmul.f32 -1.442695, %v826_v12  ;;  %v1489_v17 = vpop.eup %1488 }
 0x223   :  { %1508 = vpow2.f32 %v1220_v10  ;;  %v1219_v21 = vmul.f32 -1.442695, %v824_v15 }
 0x224   :  { %v1491_v52 = vpop.eup %1490  ;;  %1510 = vpow2.f32 %v1218_v14 }
 0x225   :  { %v1493_v23 = vpop.eup %1492  ;;  %1512 = vpow2.f32 %v1221_v47  ;;  %v1362_v25 = vpop.f32.mrb[28].mxu1 }
 0x226   :  { %v1495_v27 = vpop.eup %1494  ;;  %v857_v40 = vadd.f32 1.0, %v1493_v23  ;;  %1514 = vpow2.f32 %v1219_v21  ;;  %v883_v57 = vmul.f32 %v1489_v17, %v1362_v25  ;;  %v711_v29 = vpop.f32.mrb[29].mxu1 }
 0x227   :  { %v1497_v46 = vpop.eup %1496  ;;  %1516 = vrcp.f32 %v800_v19  ;;  %v801_v62 = vadd.f32 1.0, %v1495_v27  ;;  %v827_v48 = vadd.f32 %v711_v29, %v1900_v20  ;;  %v1363_v31 = vpop.f32.mrb[30].mxu1 }
 0x228   :  { %v1499_v49 = vpop.eup %1498  ;;  %1518 = vrcp.f32 %v857_v40  ;;  %v858_v33 = vadd.f32 1.0, %v1497_v46  ;;  %v892_v55 = vadd.f32 %v1898_v18, %v883_v57  ;;  %v884_v56 = vmul.f32 %v1491_v52, %v1363_v31  ;;  %v714_v58 = vpop.f32.mrb[31].mxu1 }
 0x229   :  { %v1501_v59 = vpop.eup %1500  ;;  %1520 = vrcp.f32 %v801_v62  ;;  %v856_v61 = vadd.f32 1.0, %v1499_v49  ;;  %v1222_v63 = vmul.f32 -1.442695, %v827_v48  ;;  %v828_v0 = vadd.f32 %v714_v58, %v1904_v24 }
 0x22a   :  { %v1503_v1 = vpop.eup %1502  ;;  %1522 = vrcp.f32 %v858_v33  ;;  %v893_v37 = vadd.f32 %v1902_v22, %v884_v56 }
 0x22b   :  { %v1505_v2 = vpop.eup %1504  ;;  %1524 = vrcp.f32 %v856_v61  ;;  %v1223_v20 = vmul.f32 -1.442695, %v828_v0 }
 0x22c   :  { %v1507_v39 = vpop.eup %1506  ;;  %1526 = vtanh.f32 %v892_v55 }
 0x22d   :  { %v1509_v4 = vpop.eup %1508  ;;  %1528 = vpow2.f32 %v1222_v63  ;;  %v1366_v18 = vpop.f32.mrb[32].mxu1 }
 0x22e   :  { %v1511_v5 = vpop.eup %1510  ;;  %v861_v41 = vadd.f32 1.0, %v1509_v4  ;;  %1530 = vtanh.f32 %v893_v37  ;;  %v887_v6 = vmul.f32 %v1505_v2, %v1366_v18  ;;  %v727_v45 = vpop.f32.mrb[33].mxu1 }
 0x22f   :  { %v1513_v7 = vpop.eup %1512  ;;  %v859_v8 = vadd.f32 1.0, %v1511_v5  ;;  %1532 = vpow2.f32 %v1223_v20  ;;  %v885_v24 = vmul.f32 %v1487_v16, %v727_v45  ;;  %v1367_v9 = vpop.f32.mrb[34].mxu1 }
 0x230   :  { %v1515_v10 = vpop.eup %1514  ;;  %1534 = vrcp.f32 %v861_v41  ;;  %v862_v22 = vadd.f32 1.0, %v1513_v7  ;;  %v896_v12 = vadd.f32 %v1906_v26, %v887_v6  ;;  %v888_v13 = vmul.f32 %v1507_v39, %v1367_v9  ;;  %v730_v14 = vpop.f32.mrb[35].mxu1 }
 0x231   :  { %v1517_v15 = vpop.eup %1516  ;;  %1536 = vrcp.f32 %v859_v8  ;;  %v860_v47 = vadd.f32 1.0, %v1515_v10  ;;  %v894_v17 = vadd.f32 %v885_v24, %v1908_v28  ;;  %v886_v19 = vmul.f32 %v1501_v59, %v730_v14 }
 0x232   :  { %v1519_v21 = vpop.eup %1518  ;;  %1538 = vrcp.f32 %v862_v22  ;;  %v897_v52 = vadd.f32 %v1910_v30, %v888_v13 }
 0x233   :  { %v1521_v23 = vpop.eup %1520  ;;  %1540 = vrcp.f32 %v860_v47  ;;  %v895_v16 = vadd.f32 %v886_v19, %v1912_v32  ;;  %v911_v31 = vsub.f32 1.0, %v1519_v21  ;;  %v929_v0 = vmul.f32 %v1519_v21, %v1762_v36 }
 0x234   :  { %v1523_v25 = vpop.eup %1522  ;;  %1542 = vtanh.f32 %v896_v12 }
 0x235   :  { %v1525_v27 = vpop.eup %1524  ;;  %1544 = vtanh.f32 %v894_v17  ;;  %v1370_v26 = vpop.f32.mrb[36].mxu1  ;;  %v912_v5 = vsub.f32 1.0, %v1523_v25  ;;  %v930_v6 = vmul.f32 %v1523_v25, %v1766_v42 }
 0x236   :  { %v1527_v40 = vpop.eup %1526  ;;  %1546 = vtanh.f32 %v897_v52  ;;  %v891_v57 = vmul.f32 %v1521_v23, %v1370_v26  ;;  %v743_v29 = vpop.f32.mrb[37].mxu1  ;;  %v910_v46 = vsub.f32 1.0, %v1525_v27  ;;  %v928_v56 = vmul.f32 %v1525_v27, %v1760_v35 }
 0x237   :  { %v1529_v28 = vpop.eup %1528  ;;  %1548 = vtanh.f32 %v895_v16  ;;  %v889_v62 = vmul.f32 %v1503_v1, %v743_v29  ;;  %v1371_v48 = vpop.f32.mrb[38].mxu1 }
 0x238   :  { %v1531_v30 = vpop.eup %1530  ;;  %v863_v49 = vadd.f32 1.0, %v1529_v28  ;;  %v900_v33 = vadd.f32 %v1914_v34, %v891_v57  ;;  %v746_v32 = vpop.f32.mrb[39].mxu1  ;;  %v919_v55 = vmul.f32 %v1527_v40, %v910_v46 }
 0x239   :  { %v1533_v58 = vpop.eup %1532  ;;  %v898_v59 = vadd.f32 %v889_v62, %v1916_v38  ;;  %v890_v61 = vmul.f32 %v1517_v15, %v746_v32  ;;  %v920_v63 = vmul.f32 %v1531_v30, %v911_v31 }
 0x23a   :  { %v1535_v37 = vpop.eup %1534  ;;  %1550 = vrcp.f32 %v863_v49  ;;  %v864_v1 = vadd.f32 1.0, %v1533_v58  ;;  %v937_v2 = vadd.f32 %v928_v56, %v919_v55  ;;  %v1039_v49 = vstv %s1143_s30 }
 0x23b   :  { %v1537_v20 = vpop.eup %1536  ;;  %1552 = vtanh.f32 %v900_v33  ;;  %v899_v39 = vadd.f32 %v890_v61, %v1918_v44  ;;  %v938_v34 = vadd.f32 %v929_v0, %v920_v63  ;;  %v915_v45 = vsub.f32 1.0, %v1535_v37 }
 0x23c   :  { %v1539_v4 = vpop.eup %1538  ;;  %1554 = vrcp.f32 %v864_v1  ;;  %1101 = vst [vmem:[#allocation8] sm:$0xff] %v937_v2  ;;  %v913_v44 = vsub.f32 1.0, %v1537_v20  ;;  %v933_v12 = vmul.f32 %v1535_v37, %v1790_v51  ;;  %v931_v14 = vmul.f32 %v1537_v20, %v1768_v43 }
 0x23d   :  { %v1541_v35 = vpop.eup %1540  ;;  %1556 = vtanh.f32 %v898_v59  ;;  %v951_v18 = vpack.c.bf16 %v938_v34, %v937_v2  ;;  %1102 = vst [vmem:[#allocation8 + $0x8] sm:$0xff] %v938_v34  ;;  %v934_v40 = vmul.f32 %v1539_v4, %v1798_v53 }
 0x23e   :  { %v1543_v38 = vpop.eup %1542  ;;  %1558 = vtanh.f32 %v899_v39  ;;  %v914_v36 = vsub.f32 1.0, %v1541_v35  ;;  %v932_v9 = vmul.f32 %v1541_v35, %v1788_v50  ;;  %v916_v50 = vsub.f32 1.0, %v1539_v4 }
 0x23f   :  { %v1545_v41 = vpop.eup %1544  ;;  %1373 = vmatpush3.bf16.msra.mxu0 %v951_v18 }
 0x240   :  { %v1547_v7 = vpop.eup %1546  ;;  %1374 = vmatprep.subr.bf16.mxu0 %v1650_v3  ;;  %v921_v8 = vmul.f32 %v1545_v41, %v912_v5  ;;  %v923_v24 = vmul.f32 %v1543_v38, %v914_v36 }
 0x241   :  { %v1549_v10 = vpop.eup %1548  ;;  %v924_v22 = vmul.f32 %v1547_v7, %v915_v45 }
 0x242   :  { %v922_v13 = vmul.f32 %v1549_v10, %v913_v44  ;;  %v939_v15 = vadd.f32 %v930_v6, %v921_v8  ;;  %v941_v47 = vadd.f32 %v932_v9, %v923_v24  ;;  %v1050_v8 = vld [vmem:[%s2016_s6] sm:$0xf] }
 0x243   :  { %v942_v17 = vadd.f32 %v933_v12, %v924_v22 }
 0x244   :  { %v1551_v42 = vpop.eup %1550  ;;  %v940_v19 = vadd.f32 %v931_v14, %v922_v13  ;;  %1103 = vst [vmem:[#allocation8 + $0x10] sm:$0xff] %v939_v15  ;;  %1105 = vst [vmem:[#allocation8 + $0x20] sm:$0xff] %v941_v47 }
 0x245   :  { %v1553_v21 = vpop.eup %1552  ;;  %v953_v52 = vpack.c.bf16 %v942_v17, %v941_v47  ;;  %1106 = vst [vmem:[#allocation8 + $0x28] sm:$0xff] %v942_v17  ;;  %v917_v27 = vsub.f32 1.0, %v1551_v42  ;;  %v935_v29 = vmul.f32 %v1551_v42, %v1800_v54  ;;  %v1467_v54 = vld [vmem:[%s2015_s5] sm:$0xff]  }
 0x246   :  { %v1555_v23 = vpop.eup %1554  ;;  %v952_v16 = vpack.c.bf16 %v940_v19, %v939_v15  ;;  %1104 = vst [vmem:[#allocation8 + $0x18] sm:$0xff] %v940_v19 }
 0x247   :  { %v1557_v25 = vpop.eup %1556  ;;  %v918_v51 = vsub.f32 1.0, %v1555_v23  ;;  %v936_v28 = vmul.f32 %v1555_v23, %v1816_v60  ;;  %v1468_v60 = vld [vmem:[%s2015_s5 + $0x8] sm:$0xff]  }
 0x248   :  { %v1559_v26 = vpop.eup %1558  ;;  %1375 = vmatpush3.bf16.msra.mxu0 %v952_v16  ;;  %v925_v43 = vmul.f32 %v1557_v25, %v916_v50 }
 0x249   :  { %1376 = vmatprep.subr.bf16.mxu0 %v1650_v3  ;;  %v926_v57 = vmul.f32 %v1559_v26, %v917_v27  ;;  %v927_v46 = vmul.f32 %v1553_v21, %v918_v51 }
 0x24a   :  { %v943_v62 = vadd.f32 %v934_v40, %v925_v43 }
 0x24b   :  { %v944_v48 = vadd.f32 %v935_v29, %v926_v57  ;;  %v945_v31 = vadd.f32 %v936_v28, %v927_v46 }
 0x24c   :  { %1377 = vmatpush3.bf16.msra.mxu0 %v953_v52  ;;  %1107 = vst [vmem:[#allocation8 + $0x30] sm:$0xff] %v943_v62 }
 0x24d   :  { %1378 = vmatprep.subr.bf16.mxu0 %v1650_v3  ;;  %v954_v30 = vpack.c.bf16 %v944_v48, %v943_v62  ;;  %1108 = vst [vmem:[#allocation8 + $0x38] sm:$0xff] %v944_v48  ;;  %1109 = vst [vmem:[#allocation8 + $0x40] sm:$0xff] %v945_v31  ;;  %v955_v53 = vpack.c.bf16 %v1753_v11, %v945_v31  ;;  %v1469_v11 = vld [vmem:[%s2015_s5 + $0x10] ss:$0 sps:$4 sm:$0xff]  }
 0x250   :  { %1379 = vmatpush3.bf16.msra.mxu0 %v954_v30 }
 0x251   :  { %1380 = vmatprep.subr.bf16.mxu0 %v1650_v3 }
 0x254   :  { %1381 = vmatpush3.bf16.msra.mxu0 %v955_v53 }
 0x255   :  { %1394 = vmatprep.subr.bf16.mxu0 %v1650_v3 }
 0x257   :  { %1383 = vmatmul.mubr.msk.bf16.vlgmr.msra.gmra.mrb[28].mxu0 %vm570_vm9, %v1467_v54 }
 0x258   :  { %1386 = vmatprep.mubr.msk.bf16.mxu0 %vm1651_vm1, %v1650_v3 }
 0x25f   :  { %1387 = vmatmul.mubr.msk.bf16.gmra.mrb[32].mxu0 %vm570_vm9, %v1468_v60 }
 0x260   :  { %1390 = vmatprep.mubr.msk.bf16.mxu0 %vm1651_vm1, %v1650_v3 }
 0x267   :  { %1391 = vmatmul.mubr.msk.bf16.gmra.mrb[36].mxu0 %vm570_vm9, %v1469_v11 }
 0x268   :  { %1400 = vmatprep.mubr.msk.bf16.mxu0 %vm1651_vm1, %v1650_v3 }
 0x32a   :  { %v1012_v33 = vpop.f32.mrb[28].mxu0 }
 0x32b   :  { %v1040_v32 = vmul.f32 %v1039_v49, %v1012_v33  ;;  %v1384_v55 = vpop.f32.mrb[29].mxu0  ;;  %vm1034_vm10 = vcmp.ge.f32.partialorder %v1012_v33, 0.0 }
 0x32c   :  { %v1015_v56 = vpop.f32.mrb[30].mxu0 }
 0x32d   :  { %vm1035_vm11 = vcmp.ge.f32.partialorder %v1015_v56, 0.0  ;;  %v1041_v58 = vmul.f32 %v1039_v49, %v1015_v56  ;;  %v1385_v59 = vpop.f32.mrb[31].mxu0  ;;  %v1045_v61 = vsel %vm1034_vm10, %v1012_v33, %v1040_v32 }
 0x32f   :  { %v1046_v63 = vsel %vm1035_vm11, %v1015_v56, %v1041_v58 }
 0x330   :  { %v1051_v0 = vpack.c.bf16 %v1046_v63, %v1045_v61 }
 0x332   :  { %v1020_v37 = vpop.f32.mrb[32].mxu0  ;;  %1395 = vmatpush3.bf16.msra.mxu0 %v1051_v0 }
 0x333   :  { %v1042_v1 = vmul.f32 %v1039_v49, %v1020_v37  ;;  %v1388_v2 = vpop.f32.mrb[33].mxu0  ;;  %1396 = vmatprep.subr.bf16.mxu0 %v1650_v3  ;;  %vm1036_vm12 = vcmp.ge.f32.partialorder %v1020_v37, 0.0 }
 0x334   :  { %v1023_v20 = vpop.f32.mrb[34].mxu0 }
 0x335   :  { %vm1037_vm13 = vcmp.ge.f32.partialorder %v1023_v20, 0.0  ;;  %v1043_v39 = vmul.f32 %v1039_v49, %v1023_v20  ;;  %v1389_v34 = vpop.f32.mrb[35].mxu0  ;;  %v1047_v4 = vsel %vm1036_vm12, %v1020_v37, %v1042_v1 }
 0x337   :  { %v1048_v35 = vsel %vm1037_vm13, %v1023_v20, %v1043_v39 }
 0x338   :  { %v1052_v18 = vpack.c.bf16 %v1048_v35, %v1047_v4 }
 0x33a   :  { %1397 = vmatpush3.bf16.msra.mxu0 %v1052_v18  ;;  %v1028_v38 = vpop.f32.mrb[36].mxu0 }
 0x33b   :  { %vm1038_vm14 = vcmp.ge.f32.partialorder %v1028_v38, 0.0  ;;  %v1044_v5 = vmul.f32 %v1039_v49, %v1028_v38  ;;  %v1392_v36 = vpop.f32.mrb[37].mxu0  ;;  %1398 = vmatprep.subr.bf16.mxu0 %v1650_v3 }
 0x33c   :  { %v1031_v41 = vpop.f32.mrb[38].mxu0 }
 0x33d   :  { %v1049_v6 = vsel %vm1038_vm14, %v1028_v38, %v1044_v5  ;;  %v1393_v45 = vpop.f32.mrb[39].mxu0 }
 0x33e   :  { %v1053_v7 = vpack.c.bf16 %v1049_v6, %v1049_v6 }
 0x340   :  { %v1058_v44 = vsel %vm106_vm0, %v1053_v7, 0 }
 0x341   :  { %1399 = vmatpush3.bf16.msra.mxu0 %v1058_v44 }
 0x344   :  { %1401 = vmatmul.mubr.msk.bf16.vlgmr.msra.gmra.mrb[40].mxu0 %vm280_vm3, %v1050_v8 }
 0x345   :  { %1605 = shalt.err (!%p1602_p3)
}
 0x346   :  { %s1606_s14 = scalar_lea.hbm %s2019_s9, 1280 }
 0x347   :  { %p1607_p4 = scmp.ne.s32.totalorder %s2019_s9, %s1606_s14  ;;  %p1610_p5 = scmp.lt.u32.totalorder %s1606_s14, %s2019_s9 }
 0x349   :  { %p1612_p6 = pnand %p1610_p5, %p1607_p4 }
 0x34b   :  { %1615 = shalt.err (!%p1612_p6)
}
 0x34c   :  { %1132 = dma.vmem_to_hbm [thread:$0]  %s1127_s11, 1280, %s2019_s9, [#allocation9], %s1647_s7, %s1647_s7, %s1648_s22  }
 0x34d   :  { %s1653_s20 = smov [#allocation7]  }
 0x34e   :  { %s1117_s2 = sshll.u32 %s1653_s20, 4  ;;  %s1118_s2 = int_to_ptr.vmem [resolvable:$true] %s1117_s2 }
 0x34f   :  { %s1616_s21 = scalar_lea.vmem %s1118_s2, 128  ;;  %p1621_p8 = scmp.lt.s32.totalorder %s1118_s2, %s1118_s2 }
 0x350   :  { %p1617_p7 = scmp.ne.s32.totalorder %s1118_s2, %s1616_s21  ;;  %p1622_p9 = scmp.lt.s32.totalorder %s1616_s21, %s1616_s21 }
 0x352   :  { %p1623_p10 = por %p1622_p9, %p1621_p8 }
 0x354   :  { %p1624_p11 = pnand %p1623_p10, %p1617_p7 }
 0x417   :  { %v1094_v3 = vpop.f32.mrb[40].mxu0 }
 0x418   :  { %1100 = vst [vmem:[#allocation7] sm:$0xff] %v1094_v3  ;;  %v1402_v24 = vpop.f32.mrb[41].mxu0 }
 0x419   :  { %v1097_v9 = vpop.f32.mrb[42].mxu0 }
 0x41a   :  { %1627 = shalt.err (!%p1624_p11)
}
 0x41b   :  { %s1628_s25 = scalar_lea.hbm %s2018_s8, 128 }
 0x41c   :  { %p1629_p12 = scmp.ne.s32.totalorder %s2018_s8, %s1628_s25  ;;  %p1632_p13 = scmp.lt.u32.totalorder %s1628_s25, %s2018_s8 }
 0x41e   :  { %p1634_p0 = pnand %p1632_p13, %p1629_p12 }
 0x420   :  { %1637 = shalt.err (!%p1634_p0)
}
 0x421   :  { %1120 = dma.vmem_to_hbm [thread:$0]  %s1118_s2, 128, %s2018_s8, [#allocation4]   ;;  %v1403_v10 = vpop.f32.mrb[43].mxu0 }
 0x422   :  { %1642 = dma.done.wait [#allocation4], 128  }
 0x423   :  { %1643 = vsyncadd [#allocation4], 4294967168 }
 0x424   :  { %1644 = dma.done.wait [#allocation9], 1280  }
 0x425   :  { %1645 = vsyncadd [#allocation9], 4294966016 }
 0x426   :  { %1139 = vsyncpa [#allocation3], 1 }
 0x427   :  { %1140 = vsyncpa [#allocation4], 1 }
 0x428   :  { %1141 = vsyncpa [#allocation9], 1 }
 0x429   :  { %1142 = vsyncpa [#allocation5], 1 }

</bundles_post_ra>
